<compile_context>
chip_gen: v5e
topology: v5e:2x2
jax: 0.10.0
libtpu: 0.0.40
codegen_flags: <defaults>
</compile_context>

<pallas_src>
import jax
import jax.numpy as jnp
from jax.experimental import pallas as pl
from jax.experimental.pallas import tpu as pltpu

VOCAB = 10
EMBED = 32
HID = 64           # RNN input = 2*EMBED = 64, hidden = 64
OUT = 10
OUT_PAD = 128      # dense output padded to a full lane width -> unmasked store
STATE = 2 * HID    # fused state slab [h0 | h1]


def rnn_forward_pallas(num1, num2, embed, params):
    """num1/num2: (B, T) int32 token ids. Returns logits (T*B, OUT_PAD) f32,
    row order t*B + b (lane padding / batch-major reorder done by caller)."""
    B, T = num1.shape
    (wih0, whh0, bih0, bhh0, wih1, whh1, bih1, bhh1, wd, bd) = params
    bf16, f32 = jnp.bfloat16, jnp.float32
    TB = T * B

    # ---------------- wrapper-side weight prep (tiny; fused under jit) --------
    b0 = bih0 + bhh0                                     # (64,)  layer-0 bias
    b1 = (bih1 + bhh1)[None, :]                          # (1,64) layer-1 bias

    # Embedding folded into the layer-0 input projection:
    #   x_t @ Wih0^T = embed[n1_t] @ Wih0^T[:32] + embed[n2_t] @ Wih0^T[32:]
    # Products are bf16 with f32 accumulation (same as the reference); the
    # in-kernel row selection is exact, so numerics match the reference.
    wih0_t = wih0.T                                      # (64,64) rows = input feats
    g1 = jnp.dot(embed.astype(bf16), wih0_t[:EMBED].astype(bf16),
                 preferred_element_type=f32) + b0        # (10,64)  (+b0 folded)
    g2 = jnp.dot(embed.astype(bf16), wih0_t[EMBED:].astype(bf16),
                 preferred_element_type=f32)             # (10,64)
    # Upper 64 lanes carry the per-step layer-1 drive (b1), so each gathered
    # drive row is a single full-width (128-lane) store.  Last row = [0 | b1]
    # is the drive of the extra (T-th) wavefront step.
    gs = jnp.concatenate(
        [jnp.concatenate([g1, jnp.broadcast_to(b1, (VOCAB, HID))], axis=1),
         jnp.concatenate([g2, jnp.zeros((VOCAB, HID), f32)], axis=1),
         jnp.concatenate([jnp.zeros((1, HID), f32), b1], axis=1)],
        axis=0)                                          # (21,128) f32

    # Wavefront block weight: s_k = tanh(s_{k-1} @ W + drive_k)
    #   s = [h0 | h1(lagged)],  W = [[Whh0^T, Wih1^T], [0, Whh1^T]]
    w_blk = jnp.concatenate(
        [jnp.concatenate([whh0.T, wih1.T], axis=1),
         jnp.concatenate([jnp.zeros((HID, HID), f32), whh1.T], axis=1)],
        axis=0).astype(bf16)                             # (128,128)

    # Dense head over the full state slab: zero rows for the h0 half.
    wd_p = jnp.zeros((STATE, OUT_PAD), f32).at[HID:, :OUT].set(wd.T).astype(bf16)
    bd_p = jnp.zeros((1, OUT_PAD), f32).at[0, :OUT].set(bd)

    def kernel(n1_ref, n2_ref,                  # SMEM (scalar prefetch)
               gs_ref, w_ref, wd_ref, bd_ref,   # VMEM inputs
               out_ref,                         # VMEM output
               drive_ref, hs_ref):              # VMEM scratch
        # ----- prologue: build the per-step drive [xw0_t + b0 | b1] in VMEM ---
        # fused embedding gather + layer-0 input projection; row = t*B + b
        for t in range(T):
            for b in range(B):
                i1 = n1_ref[b, t]
                i2 = n2_ref[b, t]
                drive_ref[pl.ds(t * B + b, 1), :] = (
                    gs_ref[pl.ds(i1, 1), :] + gs_ref[pl.ds(i2 + VOCAB, 1), :])
        # wavefront step 0 must see h1-drive = 0 (h1_{-1} = 0), not b1
        drive_ref[pl.ds(0, B), pl.ds(HID, HID)] = jnp.zeros((B, HID), jnp.float32)
        # extra final wavefront step: drive = [0 | b1] (h0 half unused)
        drive_ref[pl.ds(TB, B), :] = jnp.broadcast_to(
            gs_ref[pl.ds(2 * VOCAB, 1), :], (B, STATE))

        # ----- wavefront recurrence: 1 matmul + 1 tanh per step ---------------
        w = w_ref[...]                                    # (128,128) bf16, hoisted
        # step 0: s_{-1} = 0  ->  s_0 = tanh(drive_0) = [h0_0 | 0]  (no matmul)
        s = jnp.tanh(drive_ref[pl.ds(0, B), :])
        for k in range(1, T + 1):                         # static unroll
            d = drive_ref[pl.ds(k * B, B), :]             # (B,128) f32, vld slot
            s = jnp.tanh(jnp.dot(s.astype(jnp.bfloat16), w,
                                 preferred_element_type=jnp.float32) + d)
            hs_ref[pl.ds((k - 1) * B, B), :] = s          # h1 half = h1_{k-1}

        # ----- dense head: one lane-dense matmul + one unmasked store ---------
        out_ref[...] = jnp.dot(hs_ref[...].astype(jnp.bfloat16), wd_ref[...],
                               preferred_element_type=jnp.float32) + bd_ref[...]

    full = lambda shape: pl.BlockSpec(shape, lambda i, *_: (0, 0))

    return pl.pallas_call(
        kernel,
        out_shape=jax.ShapeDtypeStruct((TB, OUT_PAD), f32),
        grid_spec=pltpu.PrefetchScalarGridSpec(
            num_scalar_prefetch=2,                 # num1, num2 -> SMEM
            grid=(1,),                             # single shot; all VMEM-resident
            in_specs=[
                full((2 * VOCAB + 1, STATE)),      # embed-folded proj (+b0, b1 lanes)
                full((STATE, STATE)),              # wavefront block weight
                full((STATE, OUT_PAD)),            # padded dense weight
                full((1, OUT_PAD)),                # padded dense bias
            ],
            out_specs=full((TB, OUT_PAD)),
            scratch_shapes=[
                pltpu.VMEM(((T + 1) * B, STATE), f32),   # per-step drive
                pltpu.VMEM((TB, STATE), f32),            # per-step state slabs
            ],
        ),
        compiler_params=pltpu.CompilerParams(
            dimension_semantics=("arbitrary",)),
    )(num1, num2, gs, w_blk, wd_p, bd_p)


@jax.jit
def model_forward(num1, num2, embed, rnn_params):
    """Pallas-backed equivalent of myPTRNNModel.forward."""
    B, T = num1.shape
    out = rnn_forward_pallas(num1, num2, embed, rnn_params)   # (T*B, 128)
    # tiny epilogue: drop lane padding, restore (batch, time) order
    return out[:, :OUT].reshape(T, B, OUT).transpose(1, 0, 2)  # (B, T, 10)


@jax.jit
def model_forward_ref(num1, num2, embed, rnn_params):
    """Pure-JAX reference (2-layer tanh RNN + Linear) with the same
    bf16-input / f32-accumulate matmul treatment as the kernel."""
    (wih0, whh0, bih0, bhh0, wih1, whh1, bih1, bhh1, wd, bd) = rnn_params
    dot = lambda a, b: jnp.dot(a.astype(jnp.bfloat16), b.astype(jnp.bfloat16),
                               preferred_element_type=jnp.float32)
    e1 = embed[num1]
    e2 = embed[num2]
    x = jnp.transpose(jnp.concatenate([e1, e2], axis=-1), (1, 0, 2))  # (T, B, 64)
    T, B, _ = x.shape
    h0 = jnp.zeros((B, HID), jnp.float32)
    h1 = jnp.zeros((B, HID), jnp.float32)
    outs = []
    for t in range(T):
        h0 = jnp.tanh(dot(x[t], wih0.T) + bih0 + dot(h0, whh0.T) + bhh0)
        h1 = jnp.tanh(dot(h0, wih1.T) + bih1 + dot(h1, whh1.T) + bhh1)
        outs.append(dot(h1, wd.T) + bd)
    logits = jnp.stack(outs, axis=0)            # (T, B, 10)
    return jnp.transpose(logits, (1, 0, 2))     # (B, T, 10)


def init_params(key):
    """Deterministic init mimicking nn.Embedding / nn.RNN / nn.Linear shapes."""
    ks = jax.random.split(key, 12)
    bound = 1.0 / jnp.sqrt(HID)
    u = lambda k, shape: jax.random.uniform(k, shape, jnp.float32, -bound, bound)
    embed = jax.random.normal(ks[0], (VOCAB, EMBED), jnp.float32)
    wih0, whh0 = u(ks[1], (HID, HID)), u(ks[2], (HID, HID))
    bih0, bhh0 = u(ks[3], (HID,)), u(ks[4], (HID,))
    wih1, whh1 = u(ks[5], (HID, HID)), u(ks[6], (HID, HID))
    bih1, bhh1 = u(ks[7], (HID,)), u(ks[8], (HID,))
    wd, bd = u(ks[9], (OUT, HID)), u(ks[10], (OUT,))
    return embed, (wih0, whh0, bih0, bhh0, wih1, whh1, bih1, bhh1, wd, bd)


if __name__ == "__main__":
    key = jax.random.PRNGKey(0)
    kp, k1, k2 = jax.random.split(key, 3)

    B, T = 2, 8
    num1 = jax.random.randint(k1, (B, T), 0, VOCAB, dtype=jnp.int32)
    num2 = jax.random.randint(k2, (B, T), 0, VOCAB, dtype=jnp.int32)

    embed, rnn_params = init_params(kp)

    logits = jax.block_until_ready(model_forward(num1, num2, embed, rnn_params))
    assert logits.shape == (B, T, OUT), logits.shape

    ref = jax.block_until_ready(model_forward_ref(num1, num2, embed, rnn_params))
    # Both paths use bf16 matmul operands with f32 accumulation; the wavefront
    # fusion / embedding fold are exact re-associations, so only bf16
    # rounding-boundary noise on the 8-step recurrence remains.
    assert jnp.allclose(logits, ref, atol=2e-3, rtol=2e-3), (
        float(jnp.max(jnp.abs(logits - ref))))

    print("KERNEL_OK")
</pallas_src>

<mosaic_0001>
module attributes {stable_mosaic.version = 11 : i64} {
  func.func @kernel(%arg0: i32, %arg1: memref<2x8xi32, #tpu.memory_space<smem>>, %arg2: memref<2x8xi32, #tpu.memory_space<smem>>, %arg3: memref<21x128xf32, #tpu.memory_space<vmem>>, %arg4: memref<128x128xbf16, #tpu.memory_space<vmem>>, %arg5: memref<128x128xbf16, #tpu.memory_space<vmem>>, %arg6: memref<1x128xf32, #tpu.memory_space<vmem>>, %arg7: memref<16x128xf32, #tpu.memory_space<vmem>>, %arg8: memref<18x128xf32, #tpu.memory_space<vmem>>, %arg9: memref<16x128xf32, #tpu.memory_space<vmem>>) attributes {dimension_semantics = [#tpu.dimension_semantics<arbitrary>], iteration_bounds = array<i64: 1>, scalar_prefetch = 2 : i64, scratch_operands = 2 : i64, tpu.core_type = #tpu.core_type<tc>, window_params = [{pipeline_mode = #tpu.pipeline_mode<synchronous>, transform_indices = @transform_0, window_bounds = array<i64: 21, 128>}, {pipeline_mode = #tpu.pipeline_mode<synchronous>, transform_indices = @transform_1, window_bounds = array<i64: 128, 128>}, {pipeline_mode = #tpu.pipeline_mode<synchronous>, transform_indices = @transform_2, window_bounds = array<i64: 128, 128>}, {pipeline_mode = #tpu.pipeline_mode<synchronous>, transform_indices = @transform_3, window_bounds = array<i64: 1, 128>}, {pipeline_mode = #tpu.pipeline_mode<synchronous>, transform_indices = @transform_4, window_bounds = array<i64: 16, 128>}]} {
    %c0 = arith.constant 0 : index
    %c0_0 = arith.constant 0 : index
    %0 = memref.load %arg1[%c0, %c0_0] : memref<2x8xi32, #tpu.memory_space<smem>>
    %c0_1 = arith.constant 0 : index
    %c0_2 = arith.constant 0 : index
    %1 = memref.load %arg2[%c0_1, %c0_2] : memref<2x8xi32, #tpu.memory_space<smem>>
    %2 = arith.index_cast %0 : i32 to index
    %c0_3 = arith.constant 0 : index
    %3 = vector.load %arg3[%2, %c0_3] : memref<21x128xf32, #tpu.memory_space<vmem>>, vector<1x128xf32>
    %c10_i32 = arith.constant 10 : i32
    %4 = arith.addi %1, %c10_i32 : i32
    %5 = arith.index_cast %4 : i32 to index
    %c0_4 = arith.constant 0 : index
    %6 = vector.load %arg3[%5, %c0_4] : memref<21x128xf32, #tpu.memory_space<vmem>>, vector<1x128xf32>
    %7 = arith.addf %3, %6 : vector<1x128xf32>
    %c0_5 = arith.constant 0 : index
    %c0_6 = arith.constant 0 : index
    %8 = vector.load %arg8[%c0_5, %c0_6] : memref<18x128xf32, #tpu.memory_space<vmem>>, vector<1x128xf32>
    tpu.vector_store %arg8[%c0_5, %c0_6], %7 {strides = array<i32>} : memref<18x128xf32, #tpu.memory_space<vmem>>, vector<1x128xf32>,
    %c1 = arith.constant 1 : index
    %c0_7 = arith.constant 0 : index
    %9 = memref.load %arg1[%c1, %c0_7] : memref<2x8xi32, #tpu.memory_space<smem>>
    %c1_8 = arith.constant 1 : index
    %c0_9 = arith.constant 0 : index
    %10 = memref.load %arg2[%c1_8, %c0_9] : memref<2x8xi32, #tpu.memory_space<smem>>
    %11 = arith.index_cast %9 : i32 to index
    %c0_10 = arith.constant 0 : index
    %12 = vector.load %arg3[%11, %c0_10] : memref<21x128xf32, #tpu.memory_space<vmem>>, vector<1x128xf32>
    %c10_i32_11 = arith.constant 10 : i32
    %13 = arith.addi %10, %c10_i32_11 : i32
    %14 = arith.index_cast %13 : i32 to index
    %c0_12 = arith.constant 0 : index
    %15 = vector.load %arg3[%14, %c0_12] : memref<21x128xf32, #tpu.memory_space<vmem>>, vector<1x128xf32>
    %16 = arith.addf %12, %15 : vector<1x128xf32>
    %c1_13 = arith.constant 1 : index
    %c0_14 = arith.constant 0 : index
    %17 = vector.load %arg8[%c1_13, %c0_14] : memref<18x128xf32, #tpu.memory_space<vmem>>, vector<1x128xf32>
    tpu.vector_store %arg8[%c1_13, %c0_14], %16 {strides = array<i32>} : memref<18x128xf32, #tpu.memory_space<vmem>>, vector<1x128xf32>,
    %c0_15 = arith.constant 0 : index
    %c1_16 = arith.constant 1 : index
    %18 = memref.load %arg1[%c0_15, %c1_16] : memref<2x8xi32, #tpu.memory_space<smem>>
    %c0_17 = arith.constant 0 : index
    %c1_18 = arith.constant 1 : index
    %19 = memref.load %arg2[%c0_17, %c1_18] : memref<2x8xi32, #tpu.memory_space<smem>>
    %20 = arith.index_cast %18 : i32 to index
    %c0_19 = arith.constant 0 : index
    %21 = vector.load %arg3[%20, %c0_19] : memref<21x128xf32, #tpu.memory_space<vmem>>, vector<1x128xf32>
    %c10_i32_20 = arith.constant 10 : i32
    %22 = arith.addi %19, %c10_i32_20 : i32
    %23 = arith.index_cast %22 : i32 to index
    %c0_21 = arith.constant 0 : index
    %24 = vector.load %arg3[%23, %c0_21] : memref<21x128xf32, #tpu.memory_space<vmem>>, vector<1x128xf32>
    %25 = arith.addf %21, %24 : vector<1x128xf32>
    %c2 = arith.constant 2 : index
    %c0_22 = arith.constant 0 : index
    %26 = vector.load %arg8[%c2, %c0_22] : memref<18x128xf32, #tpu.memory_space<vmem>>, vector<1x128xf32>
    tpu.vector_store %arg8[%c2, %c0_22], %25 {strides = array<i32>} : memref<18x128xf32, #tpu.memory_space<vmem>>, vector<1x128xf32>,
    %c1_23 = arith.constant 1 : index
    %c1_24 = arith.constant 1 : index
    %27 = memref.load %arg1[%c1_23, %c1_24] : memref<2x8xi32, #tpu.memory_space<smem>>
    %c1_25 = arith.constant 1 : index
    %c1_26 = arith.constant 1 : index
    %28 = memref.load %arg2[%c1_25, %c1_26] : memref<2x8xi32, #tpu.memory_space<smem>>
    %29 = arith.index_cast %27 : i32 to index
    %c0_27 = arith.constant 0 : index
    %30 = vector.load %arg3[%29, %c0_27] : memref<21x128xf32, #tpu.memory_space<vmem>>, vector<1x128xf32>
    %c10_i32_28 = arith.constant 10 : i32
    %31 = arith.addi %28, %c10_i32_28 : i32
    %32 = arith.index_cast %31 : i32 to index
    %c0_29 = arith.constant 0 : index
    %33 = vector.load %arg3[%32, %c0_29] : memref<21x128xf32, #tpu.memory_space<vmem>>, vector<1x128xf32>
    %34 = arith.addf %30, %33 : vector<1x128xf32>
    %c3 = arith.constant 3 : index
    %c0_30 = arith.constant 0 : index
    %35 = vector.load %arg8[%c3, %c0_30] : memref<18x128xf32, #tpu.memory_space<vmem>>, vector<1x128xf32>
    tpu.vector_store %arg8[%c3, %c0_30], %34 {strides = array<i32>} : memref<18x128xf32, #tpu.memory_space<vmem>>, vector<1x128xf32>,
    %c0_31 = arith.constant 0 : index
    %c2_32 = arith.constant 2 : index
    %36 = memref.load %arg1[%c0_31, %c2_32] : memref<2x8xi32, #tpu.memory_space<smem>>
    %c0_33 = arith.constant 0 : index
    %c2_34 = arith.constant 2 : index
    %37 = memref.load %arg2[%c0_33, %c2_34] : memref<2x8xi32, #tpu.memory_space<smem>>
    %38 = arith.index_cast %36 : i32 to index
    %c0_35 = arith.constant 0 : index
    %39 = vector.load %arg3[%38, %c0_35] : memref<21x128xf32, #tpu.memory_space<vmem>>, vector<1x128xf32>
    %c10_i32_36 = arith.constant 10 : i32
    %40 = arith.addi %37, %c10_i32_36 : i32
    %41 = arith.index_cast %40 : i32 to index
    %c0_37 = arith.constant 0 : index
    %42 = vector.load %arg3[%41, %c0_37] : memref<21x128xf32, #tpu.memory_space<vmem>>, vector<1x128xf32>
    %43 = arith.addf %39, %42 : vector<1x128xf32>
    %c4 = arith.constant 4 : index
    %c0_38 = arith.constant 0 : index
    %44 = vector.load %arg8[%c4, %c0_38] : memref<18x128xf32, #tpu.memory_space<vmem>>, vector<1x128xf32>
    tpu.vector_store %arg8[%c4, %c0_38], %43 {strides = array<i32>} : memref<18x128xf32, #tpu.memory_space<vmem>>, vector<1x128xf32>,
    %c1_39 = arith.constant 1 : index
    %c2_40 = arith.constant 2 : index
    %45 = memref.load %arg1[%c1_39, %c2_40] : memref<2x8xi32, #tpu.memory_space<smem>>
    %c1_41 = arith.constant 1 : index
    %c2_42 = arith.constant 2 : index
    %46 = memref.load %arg2[%c1_41, %c2_42] : memref<2x8xi32, #tpu.memory_space<smem>>
    %47 = arith.index_cast %45 : i32 to index
    %c0_43 = arith.constant 0 : index
    %48 = vector.load %arg3[%47, %c0_43] : memref<21x128xf32, #tpu.memory_space<vmem>>, vector<1x128xf32>
    %c10_i32_44 = arith.constant 10 : i32
    %49 = arith.addi %46, %c10_i32_44 : i32
    %50 = arith.index_cast %49 : i32 to index
    %c0_45 = arith.constant 0 : index
    %51 = vector.load %arg3[%50, %c0_45] : memref<21x128xf32, #tpu.memory_space<vmem>>, vector<1x128xf32>
    %52 = arith.addf %48, %51 : vector<1x128xf32>
    %c5 = arith.constant 5 : index
    %c0_46 = arith.constant 0 : index
    %53 = vector.load %arg8[%c5, %c0_46] : memref<18x128xf32, #tpu.memory_space<vmem>>, vector<1x128xf32>
    tpu.vector_store %arg8[%c5, %c0_46], %52 {strides = array<i32>} : memref<18x128xf32, #tpu.memory_space<vmem>>, vector<1x128xf32>,
    %c0_47 = arith.constant 0 : index
    %c3_48 = arith.constant 3 : index
    %54 = memref.load %arg1[%c0_47, %c3_48] : memref<2x8xi32, #tpu.memory_space<smem>>
    %c0_49 = arith.constant 0 : index
    %c3_50 = arith.constant 3 : index
    %55 = memref.load %arg2[%c0_49, %c3_50] : memref<2x8xi32, #tpu.memory_space<smem>>
    %56 = arith.index_cast %54 : i32 to index
    %c0_51 = arith.constant 0 : index
    %57 = vector.load %arg3[%56, %c0_51] : memref<21x128xf32, #tpu.memory_space<vmem>>, vector<1x128xf32>
    %c10_i32_52 = arith.constant 10 : i32
    %58 = arith.addi %55, %c10_i32_52 : i32
    %59 = arith.index_cast %58 : i32 to index
    %c0_53 = arith.constant 0 : index
    %60 = vector.load %arg3[%59, %c0_53] : memref<21x128xf32, #tpu.memory_space<vmem>>, vector<1x128xf32>
    %61 = arith.addf %57, %60 : vector<1x128xf32>
    %c6 = arith.constant 6 : index
    %c0_54 = arith.constant 0 : index
    %62 = vector.load %arg8[%c6, %c0_54] : memref<18x128xf32, #tpu.memory_space<vmem>>, vector<1x128xf32>
    tpu.vector_store %arg8[%c6, %c0_54], %61 {strides = array<i32>} : memref<18x128xf32, #tpu.memory_space<vmem>>, vector<1x128xf32>,
    %c1_55 = arith.constant 1 : index
    %c3_56 = arith.constant 3 : index
    %63 = memref.load %arg1[%c1_55, %c3_56] : memref<2x8xi32, #tpu.memory_space<smem>>
    %c1_57 = arith.constant 1 : index
    %c3_58 = arith.constant 3 : index
    %64 = memref.load %arg2[%c1_57, %c3_58] : memref<2x8xi32, #tpu.memory_space<smem>>
    %65 = arith.index_cast %63 : i32 to index
    %c0_59 = arith.constant 0 : index
    %66 = vector.load %arg3[%65, %c0_59] : memref<21x128xf32, #tpu.memory_space<vmem>>, vector<1x128xf32>
    %c10_i32_60 = arith.constant 10 : i32
    %67 = arith.addi %64, %c10_i32_60 : i32
    %68 = arith.index_cast %67 : i32 to index
    %c0_61 = arith.constant 0 : index
    %69 = vector.load %arg3[%68, %c0_61] : memref<21x128xf32, #tpu.memory_space<vmem>>, vector<1x128xf32>
    %70 = arith.addf %66, %69 : vector<1x128xf32>
    %c7 = arith.constant 7 : index
    %c0_62 = arith.constant 0 : index
    %71 = vector.load %arg8[%c7, %c0_62] : memref<18x128xf32, #tpu.memory_space<vmem>>, vector<1x128xf32>
    tpu.vector_store %arg8[%c7, %c0_62], %70 {strides = array<i32>} : memref<18x128xf32, #tpu.memory_space<vmem>>, vector<1x128xf32>,
    %c0_63 = arith.constant 0 : index
    %c4_64 = arith.constant 4 : index
    %72 = memref.load %arg1[%c0_63, %c4_64] : memref<2x8xi32, #tpu.memory_space<smem>>
    %c0_65 = arith.constant 0 : index
    %c4_66 = arith.constant 4 : index
    %73 = memref.load %arg2[%c0_65, %c4_66] : memref<2x8xi32, #tpu.memory_space<smem>>
    %74 = arith.index_cast %72 : i32 to index
    %c0_67 = arith.constant 0 : index
    %75 = vector.load %arg3[%74, %c0_67] : memref<21x128xf32, #tpu.memory_space<vmem>>, vector<1x128xf32>
    %c10_i32_68 = arith.constant 10 : i32
    %76 = arith.addi %73, %c10_i32_68 : i32
    %77 = arith.index_cast %76 : i32 to index
    %c0_69 = arith.constant 0 : index
    %78 = vector.load %arg3[%77, %c0_69] : memref<21x128xf32, #tpu.memory_space<vmem>>, vector<1x128xf32>
    %79 = arith.addf %75, %78 : vector<1x128xf32>
    %c8 = arith.constant 8 : index
    %c0_70 = arith.constant 0 : index
    %80 = vector.load %arg8[%c8, %c0_70] : memref<18x128xf32, #tpu.memory_space<vmem>>, vector<1x128xf32>
    tpu.vector_store %arg8[%c8, %c0_70], %79 {strides = array<i32>} : memref<18x128xf32, #tpu.memory_space<vmem>>, vector<1x128xf32>,
    %c1_71 = arith.constant 1 : index
    %c4_72 = arith.constant 4 : index
    %81 = memref.load %arg1[%c1_71, %c4_72] : memref<2x8xi32, #tpu.memory_space<smem>>
    %c1_73 = arith.constant 1 : index
    %c4_74 = arith.constant 4 : index
    %82 = memref.load %arg2[%c1_73, %c4_74] : memref<2x8xi32, #tpu.memory_space<smem>>
    %83 = arith.index_cast %81 : i32 to index
    %c0_75 = arith.constant 0 : index
    %84 = vector.load %arg3[%83, %c0_75] : memref<21x128xf32, #tpu.memory_space<vmem>>, vector<1x128xf32>
    %c10_i32_76 = arith.constant 10 : i32
    %85 = arith.addi %82, %c10_i32_76 : i32
    %86 = arith.index_cast %85 : i32 to index
    %c0_77 = arith.constant 0 : index
    %87 = vector.load %arg3[%86, %c0_77] : memref<21x128xf32, #tpu.memory_space<vmem>>, vector<1x128xf32>
    %88 = arith.addf %84, %87 : vector<1x128xf32>
    %c9 = arith.constant 9 : index
    %c0_78 = arith.constant 0 : index
    %89 = vector.load %arg8[%c9, %c0_78] : memref<18x128xf32, #tpu.memory_space<vmem>>, vector<1x128xf32>
    tpu.vector_store %arg8[%c9, %c0_78], %88 {strides = array<i32>} : memref<18x128xf32, #tpu.memory_space<vmem>>, vector<1x128xf32>,
    %c0_79 = arith.constant 0 : index
    %c5_80 = arith.constant 5 : index
    %90 = memref.load %arg1[%c0_79, %c5_80] : memref<2x8xi32, #tpu.memory_space<smem>>
    %c0_81 = arith.constant 0 : index
    %c5_82 = arith.constant 5 : index
    %91 = memref.load %arg2[%c0_81, %c5_82] : memref<2x8xi32, #tpu.memory_space<smem>>
    %92 = arith.index_cast %90 : i32 to index
    %c0_83 = arith.constant 0 : index
    %93 = vector.load %arg3[%92, %c0_83] : memref<21x128xf32, #tpu.memory_space<vmem>>, vector<1x128xf32>
    %c10_i32_84 = arith.constant 10 : i32
    %94 = arith.addi %91, %c10_i32_84 : i32
    %95 = arith.index_cast %94 : i32 to index
    %c0_85 = arith.constant 0 : index
    %96 = vector.load %arg3[%95, %c0_85] : memref<21x128xf32, #tpu.memory_space<vmem>>, vector<1x128xf32>
    %97 = arith.addf %93, %96 : vector<1x128xf32>
    %c10 = arith.constant 10 : index
    %c0_86 = arith.constant 0 : index
    %98 = vector.load %arg8[%c10, %c0_86] : memref<18x128xf32, #tpu.memory_space<vmem>>, vector<1x128xf32>
    tpu.vector_store %arg8[%c10, %c0_86], %97 {strides = array<i32>} : memref<18x128xf32, #tpu.memory_space<vmem>>, vector<1x128xf32>,
    %c1_87 = arith.constant 1 : index
    %c5_88 = arith.constant 5 : index
    %99 = memref.load %arg1[%c1_87, %c5_88] : memref<2x8xi32, #tpu.memory_space<smem>>
    %c1_89 = arith.constant 1 : index
    %c5_90 = arith.constant 5 : index
    %100 = memref.load %arg2[%c1_89, %c5_90] : memref<2x8xi32, #tpu.memory_space<smem>>
    %101 = arith.index_cast %99 : i32 to index
    %c0_91 = arith.constant 0 : index
    %102 = vector.load %arg3[%101, %c0_91] : memref<21x128xf32, #tpu.memory_space<vmem>>, vector<1x128xf32>
    %c10_i32_92 = arith.constant 10 : i32
    %103 = arith.addi %100, %c10_i32_92 : i32
    %104 = arith.index_cast %103 : i32 to index
    %c0_93 = arith.constant 0 : index
    %105 = vector.load %arg3[%104, %c0_93] : memref<21x128xf32, #tpu.memory_space<vmem>>, vector<1x128xf32>
    %106 = arith.addf %102, %105 : vector<1x128xf32>
    %c11 = arith.constant 11 : index
    %c0_94 = arith.constant 0 : index
    %107 = vector.load %arg8[%c11, %c0_94] : memref<18x128xf32, #tpu.memory_space<vmem>>, vector<1x128xf32>
    tpu.vector_store %arg8[%c11, %c0_94], %106 {strides = array<i32>} : memref<18x128xf32, #tpu.memory_space<vmem>>, vector<1x128xf32>,
    %c0_95 = arith.constant 0 : index
    %c6_96 = arith.constant 6 : index
    %108 = memref.load %arg1[%c0_95, %c6_96] : memref<2x8xi32, #tpu.memory_space<smem>>
    %c0_97 = arith.constant 0 : index
    %c6_98 = arith.constant 6 : index
    %109 = memref.load %arg2[%c0_97, %c6_98] : memref<2x8xi32, #tpu.memory_space<smem>>
    %110 = arith.index_cast %108 : i32 to index
    %c0_99 = arith.constant 0 : index
    %111 = vector.load %arg3[%110, %c0_99] : memref<21x128xf32, #tpu.memory_space<vmem>>, vector<1x128xf32>
    %c10_i32_100 = arith.constant 10 : i32
    %112 = arith.addi %109, %c10_i32_100 : i32
    %113 = arith.index_cast %112 : i32 to index
    %c0_101 = arith.constant 0 : index
    %114 = vector.load %arg3[%113, %c0_101] : memref<21x128xf32, #tpu.memory_space<vmem>>, vector<1x128xf32>
    %115 = arith.addf %111, %114 : vector<1x128xf32>
    %c12 = arith.constant 12 : index
    %c0_102 = arith.constant 0 : index
    %116 = vector.load %arg8[%c12, %c0_102] : memref<18x128xf32, #tpu.memory_space<vmem>>, vector<1x128xf32>
    tpu.vector_store %arg8[%c12, %c0_102], %115 {strides = array<i32>} : memref<18x128xf32, #tpu.memory_space<vmem>>, vector<1x128xf32>,
    %c1_103 = arith.constant 1 : index
    %c6_104 = arith.constant 6 : index
    %117 = memref.load %arg1[%c1_103, %c6_104] : memref<2x8xi32, #tpu.memory_space<smem>>
    %c1_105 = arith.constant 1 : index
    %c6_106 = arith.constant 6 : index
    %118 = memref.load %arg2[%c1_105, %c6_106] : memref<2x8xi32, #tpu.memory_space<smem>>
    %119 = arith.index_cast %117 : i32 to index
    %c0_107 = arith.constant 0 : index
    %120 = vector.load %arg3[%119, %c0_107] : memref<21x128xf32, #tpu.memory_space<vmem>>, vector<1x128xf32>
    %c10_i32_108 = arith.constant 10 : i32
    %121 = arith.addi %118, %c10_i32_108 : i32
    %122 = arith.index_cast %121 : i32 to index
    %c0_109 = arith.constant 0 : index
    %123 = vector.load %arg3[%122, %c0_109] : memref<21x128xf32, #tpu.memory_space<vmem>>, vector<1x128xf32>
    %124 = arith.addf %120, %123 : vector<1x128xf32>
    %c13 = arith.constant 13 : index
    %c0_110 = arith.constant 0 : index
    %125 = vector.load %arg8[%c13, %c0_110] : memref<18x128xf32, #tpu.memory_space<vmem>>, vector<1x128xf32>
    tpu.vector_store %arg8[%c13, %c0_110], %124 {strides = array<i32>} : memref<18x128xf32, #tpu.memory_space<vmem>>, vector<1x128xf32>,
    %c0_111 = arith.constant 0 : index
    %c7_112 = arith.constant 7 : index
    %126 = memref.load %arg1[%c0_111, %c7_112] : memref<2x8xi32, #tpu.memory_space<smem>>
    %c0_113 = arith.constant 0 : index
    %c7_114 = arith.constant 7 : index
    %127 = memref.load %arg2[%c0_113, %c7_114] : memref<2x8xi32, #tpu.memory_space<smem>>
    %128 = arith.index_cast %126 : i32 to index
    %c0_115 = arith.constant 0 : index
    %129 = vector.load %arg3[%128, %c0_115] : memref<21x128xf32, #tpu.memory_space<vmem>>, vector<1x128xf32>
    %c10_i32_116 = arith.constant 10 : i32
    %130 = arith.addi %127, %c10_i32_116 : i32
    %131 = arith.index_cast %130 : i32 to index
    %c0_117 = arith.constant 0 : index
    %132 = vector.load %arg3[%131, %c0_117] : memref<21x128xf32, #tpu.memory_space<vmem>>, vector<1x128xf32>
    %133 = arith.addf %129, %132 : vector<1x128xf32>
    %c14 = arith.constant 14 : index
    %c0_118 = arith.constant 0 : index
    %134 = vector.load %arg8[%c14, %c0_118] : memref<18x128xf32, #tpu.memory_space<vmem>>, vector<1x128xf32>
    tpu.vector_store %arg8[%c14, %c0_118], %133 {strides = array<i32>} : memref<18x128xf32, #tpu.memory_space<vmem>>, vector<1x128xf32>,
    %c1_119 = arith.constant 1 : index
    %c7_120 = arith.constant 7 : index
    %135 = memref.load %arg1[%c1_119, %c7_120] : memref<2x8xi32, #tpu.memory_space<smem>>
    %c1_121 = arith.constant 1 : index
    %c7_122 = arith.constant 7 : index
    %136 = memref.load %arg2[%c1_121, %c7_122] : memref<2x8xi32, #tpu.memory_space<smem>>
    %137 = arith.index_cast %135 : i32 to index
    %c0_123 = arith.constant 0 : index
    %138 = vector.load %arg3[%137, %c0_123] : memref<21x128xf32, #tpu.memory_space<vmem>>, vector<1x128xf32>
    %c10_i32_124 = arith.constant 10 : i32
    %139 = arith.addi %136, %c10_i32_124 : i32
    %140 = arith.index_cast %139 : i32 to index
    %c0_125 = arith.constant 0 : index
    %141 = vector.load %arg3[%140, %c0_125] : memref<21x128xf32, #tpu.memory_space<vmem>>, vector<1x128xf32>
    %142 = arith.addf %138, %141 : vector<1x128xf32>
    %c15 = arith.constant 15 : index
    %c0_126 = arith.constant 0 : index
    %143 = vector.load %arg8[%c15, %c0_126] : memref<18x128xf32, #tpu.memory_space<vmem>>, vector<1x128xf32>
    tpu.vector_store %arg8[%c15, %c0_126], %142 {strides = array<i32>} : memref<18x128xf32, #tpu.memory_space<vmem>>, vector<1x128xf32>,
    %cst = arith.constant 0.000000e+00 : f32
    %144 = vector.broadcast %cst : f32 to vector<2x64xf32>
    %c0_127 = arith.constant 0 : index
    %c64 = arith.constant 64 : index
    %145 = vector.load %arg8[%c0_127, %c64] : memref<18x128xf32, #tpu.memory_space<vmem>>, vector<2x64xf32>
    tpu.vector_store %arg8[%c0_127, %c64], %144 {strides = array<i32>} : memref<18x128xf32, #tpu.memory_space<vmem>>, vector<2x64xf32>,
    %c20 = arith.constant 20 : index
    %c0_128 = arith.constant 0 : index
    %146 = vector.load %arg3[%c20, %c0_128] : memref<21x128xf32, #tpu.memory_space<vmem>>, vector<1x128xf32>
    %147 = vector.shape_cast %146 : vector<1x128xf32> to vector<1x128xf32>
    %148 = vector.broadcast %147 : vector<1x128xf32> to vector<2x128xf32>
    %c16 = arith.constant 16 : index
    %c0_129 = arith.constant 0 : index
    %149 = vector.load %arg8[%c16, %c0_129] : memref<18x128xf32, #tpu.memory_space<vmem>>, vector<2x128xf32>
    tpu.vector_store %arg8[%c16, %c0_129], %148 {strides = array<i32>} : memref<18x128xf32, #tpu.memory_space<vmem>>, vector<2x128xf32>,
    %c0_130 = arith.constant 0 : index
    %c0_131 = arith.constant 0 : index
    %150 = vector.load %arg4[%c0_130, %c0_131] : memref<128x128xbf16, #tpu.memory_space<vmem>>, vector<128x128xbf16>
    %c0_132 = arith.constant 0 : index
    %c0_133 = arith.constant 0 : index
    %151 = vector.load %arg8[%c0_132, %c0_133] : memref<18x128xf32, #tpu.memory_space<vmem>>, vector<2x128xf32>
    %152 = math.tanh %151 : vector<2x128xf32>
    %c2_134 = arith.constant 2 : index
    %c0_135 = arith.constant 0 : index
    %153 = vector.load %arg8[%c2_134, %c0_135] : memref<18x128xf32, #tpu.memory_space<vmem>>, vector<2x128xf32>
    %154 = arith.truncf %152 : vector<2x128xf32> to vector<2x128xbf16>
    %cst_136 = arith.constant dense<0.000000e+00> : vector<2x128xf32>
    %155 = tpu.matmul %154, %150, %cst_136 {dimension_numbers = #tpu.dot_dimension_numbers<[1], [0], [0], [1], [0, 0, 1, 1], [], []>} : vector<2x128xbf16>, vector<128x128xbf16>, vector<2x128xf32> -> vector<2x128xf32>
    %156 = arith.addf %155, %153 : vector<2x128xf32>
    %157 = math.tanh %156 : vector<2x128xf32>
    %c0_137 = arith.constant 0 : index
    %c0_138 = arith.constant 0 : index
    %158 = vector.load %arg9[%c0_137, %c0_138] : memref<16x128xf32, #tpu.memory_space<vmem>>, vector<2x128xf32>
    tpu.vector_store %arg9[%c0_137, %c0_138], %157 {strides = array<i32>} : memref<16x128xf32, #tpu.memory_space<vmem>>, vector<2x128xf32>,
    %c4_139 = arith.constant 4 : index
    %c0_140 = arith.constant 0 : index
    %159 = vector.load %arg8[%c4_139, %c0_140] : memref<18x128xf32, #tpu.memory_space<vmem>>, vector<2x128xf32>
    %160 = arith.truncf %157 : vector<2x128xf32> to vector<2x128xbf16>
    %cst_141 = arith.constant dense<0.000000e+00> : vector<2x128xf32>
    %161 = tpu.matmul %160, %150, %cst_141 {dimension_numbers = #tpu.dot_dimension_numbers<[1], [0], [0], [1], [0, 0, 1, 1], [], []>} : vector<2x128xbf16>, vector<128x128xbf16>, vector<2x128xf32> -> vector<2x128xf32>
    %162 = arith.addf %161, %159 : vector<2x128xf32>
    %163 = math.tanh %162 : vector<2x128xf32>
    %c2_142 = arith.constant 2 : index
    %c0_143 = arith.constant 0 : index
    %164 = vector.load %arg9[%c2_142, %c0_143] : memref<16x128xf32, #tpu.memory_space<vmem>>, vector<2x128xf32>
    tpu.vector_store %arg9[%c2_142, %c0_143], %163 {strides = array<i32>} : memref<16x128xf32, #tpu.memory_space<vmem>>, vector<2x128xf32>,
    %c6_144 = arith.constant 6 : index
    %c0_145 = arith.constant 0 : index
    %165 = vector.load %arg8[%c6_144, %c0_145] : memref<18x128xf32, #tpu.memory_space<vmem>>, vector<2x128xf32>
    %166 = arith.truncf %163 : vector<2x128xf32> to vector<2x128xbf16>
    %cst_146 = arith.constant dense<0.000000e+00> : vector<2x128xf32>
    %167 = tpu.matmul %166, %150, %cst_146 {dimension_numbers = #tpu.dot_dimension_numbers<[1], [0], [0], [1], [0, 0, 1, 1], [], []>} : vector<2x128xbf16>, vector<128x128xbf16>, vector<2x128xf32> -> vector<2x128xf32>
    %168 = arith.addf %167, %165 : vector<2x128xf32>
    %169 = math.tanh %168 : vector<2x128xf32>
    %c4_147 = arith.constant 4 : index
    %c0_148 = arith.constant 0 : index
    %170 = vector.load %arg9[%c4_147, %c0_148] : memref<16x128xf32, #tpu.memory_space<vmem>>, vector<2x128xf32>
    tpu.vector_store %arg9[%c4_147, %c0_148], %169 {strides = array<i32>} : memref<16x128xf32, #tpu.memory_space<vmem>>, vector<2x128xf32>,
    %c8_149 = arith.constant 8 : index
    %c0_150 = arith.constant 0 : index
    %171 = vector.load %arg8[%c8_149, %c0_150] : memref<18x128xf32, #tpu.memory_space<vmem>>, vector<2x128xf32>
    %172 = arith.truncf %169 : vector<2x128xf32> to vector<2x128xbf16>
    %cst_151 = arith.constant dense<0.000000e+00> : vector<2x128xf32>
    %173 = tpu.matmul %172, %150, %cst_151 {dimension_numbers = #tpu.dot_dimension_numbers<[1], [0], [0], [1], [0, 0, 1, 1], [], []>} : vector<2x128xbf16>, vector<128x128xbf16>, vector<2x128xf32> -> vector<2x128xf32>
    %174 = arith.addf %173, %171 : vector<2x128xf32>
    %175 = math.tanh %174 : vector<2x128xf32>
    %c6_152 = arith.constant 6 : index
    %c0_153 = arith.constant 0 : index
    %176 = vector.load %arg9[%c6_152, %c0_153] : memref<16x128xf32, #tpu.memory_space<vmem>>, vector<2x128xf32>
    tpu.vector_store %arg9[%c6_152, %c0_153], %175 {strides = array<i32>} : memref<16x128xf32, #tpu.memory_space<vmem>>, vector<2x128xf32>,
    %c10_154 = arith.constant 10 : index
    %c0_155 = arith.constant 0 : index
    %177 = vector.load %arg8[%c10_154, %c0_155] : memref<18x128xf32, #tpu.memory_space<vmem>>, vector<2x128xf32>
    %178 = arith.truncf %175 : vector<2x128xf32> to vector<2x128xbf16>
    %cst_156 = arith.constant dense<0.000000e+00> : vector<2x128xf32>
    %179 = tpu.matmul %178, %150, %cst_156 {dimension_numbers = #tpu.dot_dimension_numbers<[1], [0], [0], [1], [0, 0, 1, 1], [], []>} : vector<2x128xbf16>, vector<128x128xbf16>, vector<2x128xf32> -> vector<2x128xf32>
    %180 = arith.addf %179, %177 : vector<2x128xf32>
    %181 = math.tanh %180 : vector<2x128xf32>
    %c8_157 = arith.constant 8 : index
    %c0_158 = arith.constant 0 : index
    %182 = vector.load %arg9[%c8_157, %c0_158] : memref<16x128xf32, #tpu.memory_space<vmem>>, vector<2x128xf32>
    tpu.vector_store %arg9[%c8_157, %c0_158], %181 {strides = array<i32>} : memref<16x128xf32, #tpu.memory_space<vmem>>, vector<2x128xf32>,
    %c12_159 = arith.constant 12 : index
    %c0_160 = arith.constant 0 : index
    %183 = vector.load %arg8[%c12_159, %c0_160] : memref<18x128xf32, #tpu.memory_space<vmem>>, vector<2x128xf32>
    %184 = arith.truncf %181 : vector<2x128xf32> to vector<2x128xbf16>
    %cst_161 = arith.constant dense<0.000000e+00> : vector<2x128xf32>
    %185 = tpu.matmul %184, %150, %cst_161 {dimension_numbers = #tpu.dot_dimension_numbers<[1], [0], [0], [1], [0, 0, 1, 1], [], []>} : vector<2x128xbf16>, vector<128x128xbf16>, vector<2x128xf32> -> vector<2x128xf32>
    %186 = arith.addf %185, %183 : vector<2x128xf32>
    %187 = math.tanh %186 : vector<2x128xf32>
    %c10_162 = arith.constant 10 : index
    %c0_163 = arith.constant 0 : index
    %188 = vector.load %arg9[%c10_162, %c0_163] : memref<16x128xf32, #tpu.memory_space<vmem>>, vector<2x128xf32>
    tpu.vector_store %arg9[%c10_162, %c0_163], %187 {strides = array<i32>} : memref<16x128xf32, #tpu.memory_space<vmem>>, vector<2x128xf32>,
    %c14_164 = arith.constant 14 : index
    %c0_165 = arith.constant 0 : index
    %189 = vector.load %arg8[%c14_164, %c0_165] : memref<18x128xf32, #tpu.memory_space<vmem>>, vector<2x128xf32>
    %190 = arith.truncf %187 : vector<2x128xf32> to vector<2x128xbf16>
    %cst_166 = arith.constant dense<0.000000e+00> : vector<2x128xf32>
    %191 = tpu.matmul %190, %150, %cst_166 {dimension_numbers = #tpu.dot_dimension_numbers<[1], [0], [0], [1], [0, 0, 1, 1], [], []>} : vector<2x128xbf16>, vector<128x128xbf16>, vector<2x128xf32> -> vector<2x128xf32>
    %192 = arith.addf %191, %189 : vector<2x128xf32>
    %193 = math.tanh %192 : vector<2x128xf32>
    %c12_167 = arith.constant 12 : index
    %c0_168 = arith.constant 0 : index
    %194 = vector.load %arg9[%c12_167, %c0_168] : memref<16x128xf32, #tpu.memory_space<vmem>>, vector<2x128xf32>
    tpu.vector_store %arg9[%c12_167, %c0_168], %193 {strides = array<i32>} : memref<16x128xf32, #tpu.memory_space<vmem>>, vector<2x128xf32>,
    %c16_169 = arith.constant 16 : index
    %c0_170 = arith.constant 0 : index
    %195 = vector.load %arg8[%c16_169, %c0_170] : memref<18x128xf32, #tpu.memory_space<vmem>>, vector<2x128xf32>
    %196 = arith.truncf %193 : vector<2x128xf32> to vector<2x128xbf16>
    %cst_171 = arith.constant dense<0.000000e+00> : vector<2x128xf32>
    %197 = tpu.matmul %196, %150, %cst_171 {dimension_numbers = #tpu.dot_dimension_numbers<[1], [0], [0], [1], [0, 0, 1, 1], [], []>} : vector<2x128xbf16>, vector<128x128xbf16>, vector<2x128xf32> -> vector<2x128xf32>
    %198 = arith.addf %197, %195 : vector<2x128xf32>
    %199 = math.tanh %198 : vector<2x128xf32>
    %c14_172 = arith.constant 14 : index
    %c0_173 = arith.constant 0 : index
    %200 = vector.load %arg9[%c14_172, %c0_173] : memref<16x128xf32, #tpu.memory_space<vmem>>, vector<2x128xf32>
    tpu.vector_store %arg9[%c14_172, %c0_173], %199 {strides = array<i32>} : memref<16x128xf32, #tpu.memory_space<vmem>>, vector<2x128xf32>,
    %c0_174 = arith.constant 0 : index
    %c0_175 = arith.constant 0 : index
    %201 = vector.load %arg9[%c0_174, %c0_175] : memref<16x128xf32, #tpu.memory_space<vmem>>, vector<16x128xf32>
    %202 = arith.truncf %201 : vector<16x128xf32> to vector<16x128xbf16>
    %c0_176 = arith.constant 0 : index
    %c0_177 = arith.constant 0 : index
    %203 = vector.load %arg5[%c0_176, %c0_177] : memref<128x128xbf16, #tpu.memory_space<vmem>>, vector<128x128xbf16>
    %cst_178 = arith.constant dense<0.000000e+00> : vector<16x128xf32>
    %204 = tpu.matmul %202, %203, %cst_178 {dimension_numbers = #tpu.dot_dimension_numbers<[1], [0], [0], [1], [0, 0, 1, 1], [], []>} : vector<16x128xbf16>, vector<128x128xbf16>, vector<16x128xf32> -> vector<16x128xf32>
    %c0_179 = arith.constant 0 : index
    %c0_180 = arith.constant 0 : index
    %205 = vector.load %arg6[%c0_179, %c0_180] : memref<1x128xf32, #tpu.memory_space<vmem>>, vector<1x128xf32>
    %206 = vector.broadcast %205 : vector<1x128xf32> to vector<16x128xf32>
    %207 = arith.addf %204, %206 : vector<16x128xf32>
    %c0_181 = arith.constant 0 : index
    %c0_182 = arith.constant 0 : index
    %208 = vector.load %arg7[%c0_181, %c0_182] : memref<16x128xf32, #tpu.memory_space<vmem>>, vector<16x128xf32>
    tpu.vector_store %arg7[%c0_181, %c0_182], %207 {strides = array<i32>} : memref<16x128xf32, #tpu.memory_space<vmem>>, vector<16x128xf32>,
    return
  }
  func.func @transform_0(%arg0: i32, %arg1: memref<2x8xi32, #tpu.memory_space<smem>>, %arg2: memref<2x8xi32, #tpu.memory_space<smem>>) -> (i32, i32) {
    %c0_i32 = arith.constant 0 : i32
    %c0_i32_0 = arith.constant 0 : i32
    %c0_i32_1 = arith.constant 0 : i32
    return %c0_i32, %c0_i32_0 : i32, i32
  }
  func.func @transform_1(%arg0: i32, %arg1: memref<2x8xi32, #tpu.memory_space<smem>>, %arg2: memref<2x8xi32, #tpu.memory_space<smem>>) -> (i32, i32) {
    %c0_i32 = arith.constant 0 : i32
    %c0_i32_0 = arith.constant 0 : i32
    %c0_i32_1 = arith.constant 0 : i32
    return %c0_i32, %c0_i32_0 : i32, i32
  }
  func.func @transform_2(%arg0: i32, %arg1: memref<2x8xi32, #tpu.memory_space<smem>>, %arg2: memref<2x8xi32, #tpu.memory_space<smem>>) -> (i32, i32) {
    %c0_i32 = arith.constant 0 : i32
    %c0_i32_0 = arith.constant 0 : i32
    %c0_i32_1 = arith.constant 0 : i32
    return %c0_i32, %c0_i32_0 : i32, i32
  }
  func.func @transform_3(%arg0: i32, %arg1: memref<2x8xi32, #tpu.memory_space<smem>>, %arg2: memref<2x8xi32, #tpu.memory_space<smem>>) -> (i32, i32) {
    %c0_i32 = arith.constant 0 : i32
    %c0_i32_0 = arith.constant 0 : i32
    %c0_i32_1 = arith.constant 0 : i32
    return %c0_i32, %c0_i32_0 : i32, i32
  }
  func.func @transform_4(%arg0: i32, %arg1: memref<2x8xi32, #tpu.memory_space<smem>>, %arg2: memref<2x8xi32, #tpu.memory_space<smem>>) -> (i32, i32) {
    %c0_i32 = arith.constant 0 : i32
    %c0_i32_0 = arith.constant 0 : i32
    %c0_i32_1 = arith.constant 0 : i32
    return %c0_i32, %c0_i32_0 : i32, i32
  }
}

</mosaic_0001>

<bundles_post_ra>
// kernel: model_forward.1
= control target key start
LH: loop header
LB: loop body
LE: loop exit
PB: predicated region body
PF: predicated region fallthrough
CT: control target
= control target key end

     0   :  { %s697_s27 = smov [#allocation5]   ;;  %s698_s28 = smov [#allocation6]   ;;  %s940_s0 = inlined_call_operand.vmem [shape: s32[2,8], index: 0, kind: input, shape index: {}]   ;;  %s941_s2 = inlined_call_operand.vmem [shape: f32[21,128], index: 2, kind: input, shape index: {}]   ;;  %s942_s3 = inlined_call_operand.vmem [shape: bf16[128,128], index: 3, kind: input, shape index: {}]   ;;  %s943_s4 = inlined_call_operand.vmem [shape: bf16[128,128], index: 4, kind: input, shape index: {}]   ;;  %s944_s5 = inlined_call_operand.vmem [shape: f32[1,128], index: 5, kind: input, shape index: {}]   ;;  %s945_s6 = inlined_call_operand.vmem [shape: f32[16,128], index: 6, kind: output, shape index: {}]   ;;  %s946_s1 = inlined_call_operand.vmem [shape: s32[2,8], index: 1, kind: input, shape index: {}]  }
   0x1   :  { %s12_s23 = sshll.u32 %s940_s0, 4  ;;  %s17_s26 = sshll.u32 %s946_s1, 4  ;;  %s13_s23 = int_to_ptr.vmem [resolvable:$true] %s12_s23  ;;  %s18_s26 = int_to_ptr.vmem [resolvable:$true] %s17_s26 }
   0x2   :  { %15 = dma.vmem_to_smem %s13_s23, 32, %s697_s27, [#allocation4] }
   0x3   :  { %20 = dma.vmem_to_smem %s18_s26, 32, %s698_s28, [#allocation4] }
   0x4   :  { %695 = dma.done.wait [#allocation4], 64 }
   0x5   :  { %696 = vsyncadd [#allocation4], 4294967232 }
   0x6   :  { %23 = sfence }
   0x7   :  { %v744_v0 = vld [vmem:[%s942_s3 + $0x38] sm:$0xff]  ;;  %s32_s7 = sld [smem:[#allocation5]]  ;;  %v750_v1 = vld [vmem:[%s942_s3 + $0x30] sm:$0xff]  ;;  %v759_v2 = vld [vmem:[%s942_s3 + $0x28] sm:$0xff]  ;;  %vm176_vm0 = vcmask 1041920   ;;  %v699_v15 = vmov 0.0  }
   0x8   :  { %s33_s0 = sld [smem:[#allocation6]]  ;;  %249 = vmatpush.bf16.msra.mxu0 %v744_v0  ;;  %266 = vmatpush.bf16.msra.mxu1 %v744_v0  ;;  %v782_v7 = vld [vmem:[%s942_s3 + $0x20] sm:$0xff]  ;;  %v635_v14 = vld [vmem:[%s942_s3 + $0x18] sm:$0xff]  ;;  %v634_v18 = vld [vmem:[%s942_s3 + $0x10] sm:$0xff] }
   0x9   :  { %s523_s9 = sld [smem:[#allocation5 + $0x80]]  ;;  %283 = vmatpush.bf16.msra.mxu2 %v744_v0  ;;  %300 = vmatpush.bf16.msra.mxu3 %v744_v0  ;;  %v633_v20 = vld [vmem:[%s942_s3 + $0x8] sm:$0xff]  ;;  %v632_v21 = vld [vmem:[%s942_s3] sm:$0xff] }
   0xa   :  { %s524_s10 = sld [smem:[#allocation6 + $0x80]] }
   0xb   :  { %s526_s11 = sld [smem:[#allocation5 + $0x1]] }
   0xc   :  { %s527_s12 = sld [smem:[#allocation6 + $0x1]]  ;;  %250 = vmatpush.bf16.msra.mxu0 %v750_v1  ;;  %267 = vmatpush.bf16.msra.mxu1 %v750_v1 }
   0xd   :  { %s34_s17 = scalar_lea.vmem %s941_s2, %s32_s7  ;;  %s529_s18 = sld [smem:[#allocation5 + $0x81]]  ;;  %284 = vmatpush.bf16.msra.mxu2 %v750_v1  ;;  %301 = vmatpush.bf16.msra.mxu3 %v750_v1 }
   0xe   :  { %v35_v3 = vld [vmem:[%s34_s17] sm:$0x1]  ;;  %s475_s21 = scalar_lea.vmem %s941_s2, %s33_s0  ;;  %s768_s22 = sld [smem:[#allocation6 + $0x81]] }
   0xf   :  { %v522_v4 = vld [vmem:[%s475_s21 + $0xa] sm:$0x1]  ;;  %s43_s25 = scalar_lea.vmem %s941_s2, %s523_s9  ;;  %s532_s3 = sld [smem:[#allocation5 + $0x2]] }
  0x10   :  { %v39_v5 = vadd.f32 %v522_v4, %v35_v3  ;;  %v44_v6 = vld [vmem:[%s43_s25] sm:$0x1]  ;;  %s478_s28 = scalar_lea.vmem %s941_s2, %s524_s10  ;;  %251 = vmatpush.bf16.msra.mxu0 %v759_v2  ;;  %268 = vmatpush.bf16.msra.mxu1 %v759_v2  ;;  %s533_s25 = sld [smem:[#allocation6 + $0x2]] }
  0x11   :  { %v525_v8 = vld [vmem:[%s478_s28 + $0xa] sm:$0x1]  ;;  %s52_s8 = scalar_lea.vmem %s941_s2, %s526_s11  ;;  %285 = vmatpush.bf16.msra.mxu2 %v759_v2  ;;  %302 = vmatpush.bf16.msra.mxu3 %v759_v2  ;;  %s535_s26 = sld [smem:[#allocation5 + $0x82]] }
  0x12   :  { %40 = vst [vmem:[#allocation2] sm:$0x1] %v39_v5  ;;  %v48_v9 = vadd.f32 %v525_v8, %v44_v6  ;;  %v53_v10 = vld [vmem:[%s52_s8] sm:$0x1]  ;;  %s481_s10 = scalar_lea.vmem %s941_s2, %s527_s12  ;;  %s536_s27 = sld [smem:[#allocation6 + $0x82]] }
  0x13   :  { %v528_v11 = vld [vmem:[%s481_s10 + $0xa] sm:$0x1]  ;;  %s61_s15 = scalar_lea.vmem %s941_s2, %s529_s18  ;;  %s538_s11 = sld [smem:[#allocation5 + $0x3]] }
  0x14   :  { %49 = vst [vmem:[#allocation2 + $0x1] sm:$0x1] %v48_v9  ;;  %v57_v12 = vadd.f32 %v528_v11, %v53_v10  ;;  %v62_v13 = vld [vmem:[%s61_s15] sm:$0x1]  ;;  %s484_s17 = scalar_lea.vmem %s941_s2, %s768_s22  ;;  %252 = vmatpush.bf16.msra.mxu0 %v782_v7  ;;  %269 = vmatpush.bf16.msra.mxu1 %v782_v7  ;;  %s539_s16 = sld [smem:[#allocation6 + $0x3]] }
  0x15   :  { %177 = vst.msk [vmem:[#allocation2] sm:$0x3] %vm176_vm0, %v699_v15  ;;  %v531_v16 = vld [vmem:[%s484_s17 + $0xa] sm:$0x1]  ;;  %286 = vmatpush.bf16.msra.mxu2 %v782_v7  ;;  %303 = vmatpush.bf16.msra.mxu3 %v782_v7  ;;  %s70_s30 = scalar_lea.vmem %s941_s2, %s532_s3  ;;  %s541_s17 = sld [smem:[#allocation5 + $0x83]] }
  0x16   :  { %58 = vst [vmem:[#allocation2 + $0x2] sm:$0x1] %v57_v12  ;;  %v66_v17 = vadd.f32 %v531_v16, %v62_v13  ;;  %s487_s8 = scalar_lea.vmem %s941_s2, %s533_s25  ;;  %v71_v24 = vld [vmem:[%s70_s30] sm:$0x1]  ;;  %s542_s19 = sld [smem:[#allocation6 + $0x83]] }
  0x17   :  { %s79_s10 = scalar_lea.vmem %s941_s2, %s535_s26  ;;  %v534_v25 = vld [vmem:[%s487_s8 + $0xa] sm:$0x1]  ;;  %s544_s29 = sld [smem:[#allocation5 + $0x4]] }
  0x18   :  { %67 = vst [vmem:[#allocation2 + $0x3] sm:$0x1] %v66_v17  ;;  %253 = vmatpush.bf16.msra.mxu0 %v635_v14  ;;  %270 = vmatpush.bf16.msra.mxu1 %v635_v14  ;;  %s490_s15 = scalar_lea.vmem %s941_s2, %s536_s27  ;;  %v80_v26 = vld [vmem:[%s79_s10] sm:$0x1]  ;;  %v75_v27 = vadd.f32 %v534_v25, %v71_v24  ;;  %s545_s30 = sld [smem:[#allocation6 + $0x4]] }
  0x19   :  { %287 = vmatpush.bf16.msra.mxu2 %v635_v14  ;;  %304 = vmatpush.bf16.msra.mxu3 %v635_v14  ;;  %v537_v28 = vld [vmem:[%s490_s15 + $0xa] sm:$0x1]  ;;  %s88_s20 = scalar_lea.vmem %s941_s2, %s538_s11  ;;  %s547_s7 = sld [smem:[#allocation5 + $0x84]] }
  0x1a   :  { %v84_v29 = vadd.f32 %v537_v28, %v80_v26  ;;  %76 = vst [vmem:[#allocation2 + $0x4] sm:$0x1] %v75_v27  ;;  %s493_s23 = scalar_lea.vmem %s941_s2, %s539_s16  ;;  %v89_v36 = vld [vmem:[%s88_s20] sm:$0x1]  ;;  %s548_s0 = sld [smem:[#allocation6 + $0x84]] }
  0x1b   :  { %s97_s25 = scalar_lea.vmem %s941_s2, %s541_s17  ;;  %v540_v37 = vld [vmem:[%s493_s23 + $0xa] sm:$0x1]  ;;  %s550_s18 = sld [smem:[#allocation5 + $0x5]] }
  0x1c   :  { %v197_v19 = vld [vmem:[#allocation2] sm:$0x3]  ;;  %254 = vmatpush.bf16.msra.mxu0 %v634_v18  ;;  %271 = vmatpush.bf16.msra.mxu1 %v634_v18  ;;  %85 = vst [vmem:[#allocation2 + $0x5] sm:$0x1] %v84_v29  ;;  %s496_s28 = scalar_lea.vmem %s941_s2, %s542_s19  ;;  %v93_v39 = vadd.f32 %v540_v37, %v89_v36  ;;  %s551_s20 = sld [smem:[#allocation6 + $0x5]] }
  0x1d   :  { %653 = vtanh.f32 %v197_v19  ;;  %288 = vmatpush.bf16.msra.mxu2 %v634_v18  ;;  %305 = vmatpush.bf16.msra.mxu3 %v634_v18  ;;  %v98_v38 = vld [vmem:[%s97_s25] sm:$0x1]  ;;  %v543_v40 = vld [vmem:[%s496_s28 + $0xa] sm:$0x1]  ;;  %s106_s9 = scalar_lea.vmem %s941_s2, %s544_s29  ;;  %s553_s21 = sld [smem:[#allocation5 + $0x85]] }
  0x1e   :  { %v102_v41 = vadd.f32 %v543_v40, %v98_v38  ;;  %94 = vst [vmem:[#allocation2 + $0x6] sm:$0x1] %v93_v39  ;;  %s499_s14 = scalar_lea.vmem %s941_s2, %s545_s30  ;;  %v107_v48 = vld [vmem:[%s106_s9] sm:$0x1]  ;;  %s554_s22 = sld [smem:[#allocation6 + $0x85]] }
  0x1f   :  { %v199_v30 = vld [vmem:[#allocation2 + $0x2] sm:$0x3]  ;;  %s115_s16 = scalar_lea.vmem %s941_s2, %s547_s7  ;;  %v546_v49 = vld [vmem:[%s499_s14 + $0xa] sm:$0x1]  ;;  %s556_s1 = sld [smem:[#allocation5 + $0x6]] }
  0x20   :  { %255 = vmatpush.bf16.msra.mxu0 %v633_v20  ;;  %272 = vmatpush.bf16.msra.mxu1 %v633_v20  ;;  %103 = vst [vmem:[#allocation2 + $0x7] sm:$0x1] %v102_v41  ;;  %s502_s12 = scalar_lea.vmem %s941_s2, %s548_s0  ;;  %v116_v50 = vld [vmem:[%s115_s16] sm:$0x1]  ;;  %v111_v51 = vadd.f32 %v546_v49, %v107_v48  ;;  %s557_s9 = sld [smem:[#allocation6 + $0x6]] }
  0x21   :  { %289 = vmatpush.bf16.msra.mxu2 %v633_v20  ;;  %306 = vmatpush.bf16.msra.mxu3 %v633_v20  ;;  %v549_v52 = vld [vmem:[%s502_s12 + $0xa] sm:$0x1]  ;;  %s124_s3 = scalar_lea.vmem %s941_s2, %s550_s18  ;;  %s559_s10 = sld [smem:[#allocation5 + $0x86]] }
  0x22   :  { %v120_v53 = vadd.f32 %v549_v52, %v116_v50  ;;  %112 = vst [vmem:[#allocation2 + $0x8] sm:$0x1] %v111_v51  ;;  %s505_s27 = scalar_lea.vmem %s941_s2, %s551_s20  ;;  %v125_v60 = vld [vmem:[%s124_s3] sm:$0x1]  ;;  %s560_s13 = sld [smem:[#allocation6 + $0x86]] }
  0x23   :  { %v654_v22 = vpop.eup %653  ;;  %v264_v42 = vld [vmem:[#allocation2 + $0x4] sm:$0x3]  ;;  %s133_s30 = scalar_lea.vmem %s941_s2, %s553_s21  ;;  %v552_v61 = vld [vmem:[%s505_s27 + $0xa] sm:$0x1]  ;;  %s562_s24 = sld [smem:[#allocation5 + $0x7]] }
  0x24   :  { %v200_v23 = vpack.c.bf16 %v654_v22, %v654_v22  ;;  %256 = vmatpush.bf16.msra.mxu0 %v632_v21  ;;  %273 = vmatpush.bf16.msra.mxu1 %v632_v21  ;;  %121 = vst [vmem:[#allocation2 + $0x9] sm:$0x1] %v120_v53  ;;  %s508_s8 = scalar_lea.vmem %s941_s2, %s554_s22  ;;  %v134_v62 = vld [vmem:[%s133_s30] sm:$0x1]  ;;  %v129_v63 = vadd.f32 %v552_v61, %v125_v60  ;;  %s563_s3 = sld [smem:[#allocation6 + $0x7]] }
  0x25   :  { %290 = vmatpush.bf16.msra.mxu2 %v632_v21  ;;  %307 = vmatpush.bf16.msra.mxu3 %v632_v21  ;;  %s142_s11 = scalar_lea.vmem %s941_s2, %s556_s1  ;;  %s565_s25 = sld [smem:[#allocation5 + $0x87]] }
  0x26   :  { %130 = vst [vmem:[#allocation2 + $0xa] sm:$0x1] %v129_v63  ;;  %s511_s19 = scalar_lea.vmem %s941_s2, %s557_s9  ;;  %v143_v8 = vld [vmem:[%s142_s11] sm:$0x1]  ;;  %s566_s26 = sld [smem:[#allocation6 + $0x87]] }
  0x27   :  { %257 = vmatmul.bf16.vlgmr.msra.gmra.mxu0 %v200_v23  ;;  %v281_v54 = vld [vmem:[#allocation2 + $0x6] sm:$0x3]  ;;  %s151_s20 = scalar_lea.vmem %s941_s2, %s559_s10  ;;  %v558_v9 = vld [vmem:[%s511_s19 + $0xa] sm:$0x1] }
  0x28   :  { %317 = vmatpush.bf16.msrb.mxu0 %v744_v0  ;;  %334 = vmatpush.bf16.msrb.mxu1 %v744_v0  ;;  %s514_s23 = scalar_lea.vmem %s941_s2, %s560_s13  ;;  %v152_v10 = vld [vmem:[%s151_s20] sm:$0x1]  ;;  %v147_v11 = vadd.f32 %v558_v9, %v143_v8 }
  0x29   :  { %351 = vmatpush.bf16.msrb.mxu2 %v744_v0  ;;  %368 = vmatpush.bf16.msrb.mxu3 %v744_v0  ;;  %v555_v0 = vld [vmem:[%s508_s8 + $0xa] sm:$0x1]  ;;  %s160_s29 = scalar_lea.vmem %s941_s2, %s562_s24 }
  0x2a   :  { %v561_v12 = vld [vmem:[%s514_s23 + $0xa] sm:$0x1]  ;;  %148 = vst [vmem:[#allocation2 + $0xc] sm:$0x1] %v147_v11  ;;  %s517_s0 = scalar_lea.vmem %s941_s2, %s563_s3 }
  0x2b   :  { %v156_v13 = vadd.f32 %v561_v12, %v152_v10  ;;  %s169_s9 = scalar_lea.vmem %s941_s2, %s565_s25 }
  0x2c   :  { %318 = vmatpush.bf16.msrb.mxu0 %v750_v1  ;;  %335 = vmatpush.bf16.msrb.mxu1 %v750_v1  ;;  %s520_s14 = scalar_lea.vmem %s941_s2, %s566_s26  ;;  %v170_v22 = vld [vmem:[%s169_s9] sm:$0x1] }
  0x2d   :  { %352 = vmatpush.bf16.msrb.mxu2 %v750_v1  ;;  %369 = vmatpush.bf16.msrb.mxu3 %v750_v1  ;;  %v138_v1 = vadd.f32 %v555_v0, %v134_v62  ;;  %157 = vst [vmem:[#allocation2 + $0xd] sm:$0x1] %v156_v13  ;;  %v567_v24 = vld [vmem:[%s520_s14 + $0xa] sm:$0x1] }
  0x2e   :  { %v174_v25 = vadd.f32 %v567_v24, %v170_v22 }
  0x2f   :  { %139 = vst [vmem:[#allocation2 + $0xb] sm:$0x1] %v138_v1 }
  0x30   :  { %319 = vmatpush.bf16.msrb.mxu0 %v759_v2  ;;  %336 = vmatpush.bf16.msrb.mxu1 %v759_v2  ;;  %175 = vst [vmem:[#allocation2 + $0xf] sm:$0x1] %v174_v25 }
  0x31   :  { %353 = vmatpush.bf16.msrb.mxu2 %v759_v2  ;;  %370 = vmatpush.bf16.msrb.mxu3 %v759_v2  ;;  %v298_v2 = vld [vmem:[#allocation2 + $0x8] sm:$0x3] }
  0x34   :  { %320 = vmatpush.bf16.msrb.mxu0 %v782_v7  ;;  %337 = vmatpush.bf16.msrb.mxu1 %v782_v7  ;;  %v332_v26 = vld [vmem:[#allocation2 + $0xc] sm:$0x3] }
  0x35   :  { %354 = vmatpush.bf16.msrb.mxu2 %v782_v7  ;;  %371 = vmatpush.bf16.msrb.mxu3 %v782_v7 }
  0x38   :  { %321 = vmatpush.bf16.msrb.mxu0 %v635_v14  ;;  %338 = vmatpush.bf16.msrb.mxu1 %v635_v14 }
  0x39   :  { %355 = vmatpush.bf16.msrb.mxu2 %v635_v14  ;;  %372 = vmatpush.bf16.msrb.mxu3 %v635_v14  ;;  %v315_v14 = vld [vmem:[#allocation2 + $0xa] sm:$0x3] }
  0x3c   :  { %322 = vmatpush.bf16.msrb.mxu0 %v634_v18  ;;  %339 = vmatpush.bf16.msrb.mxu1 %v634_v18 }
  0x3d   :  { %356 = vmatpush.bf16.msrb.mxu2 %v634_v18  ;;  %373 = vmatpush.bf16.msrb.mxu3 %v634_v18 }
  0x40   :  { %323 = vmatpush.bf16.msrb.mxu0 %v633_v20  ;;  %340 = vmatpush.bf16.msrb.mxu1 %v633_v20 }
  0x41   :  { %357 = vmatpush.bf16.msrb.mxu2 %v633_v20  ;;  %374 = vmatpush.bf16.msrb.mxu3 %v633_v20  ;;  %v161_v20 = vld [vmem:[%s160_s29] sm:$0x1] }
  0x44   :  { %324 = vmatpush.bf16.msrb.mxu0 %v632_v21  ;;  %341 = vmatpush.bf16.msrb.mxu1 %v632_v21 }
  0x45   :  { %358 = vmatpush.bf16.msrb.mxu2 %v632_v21  ;;  %375 = vmatpush.bf16.msrb.mxu3 %v632_v21  ;;  %v564_v21 = vld [vmem:[%s517_s0 + $0xa] sm:$0x1] }
  0x46   :  { %v165_v23 = vadd.f32 %v564_v21, %v161_v20 }
  0x48   :  { %166 = vst [vmem:[#allocation2 + $0xe] sm:$0x1] %v165_v23 }
  0x4f   :  { %v349_v36 = vld [vmem:[#allocation2 + $0xe] sm:$0x3] }
  0xa4   :  { %v258_v31 = vpop.f32.mrf.mxu0 }
  0xa5   :  { %v259_v32 = vadd.f32 %v258_v31, %v199_v30 }
  0xa7   :  { %655 = vtanh.f32 %v259_v32  ;;  %v647_v32 = vld [vmem:[%s943_s4 + $0x38] sm:$0xff] }
  0xa8   :  { %454 = vmatpush.bf16.msra.mxu0 %v647_v32 }
  0xac   :  { %v260_v33 = vpop.f32.mrf.mxu0 }
  0xad   :  { %v656_v34 = vpop.eup %655  ;;  %v651_v33 = vld [vmem:[%s941_s2 + $0x14] ss:$0 sm:$0xff] }
  0xae   :  { %263 = vst [vmem:[#allocation3] sm:$0x3] %v656_v34  ;;  %v265_v35 = vpack.c.bf16 %v656_v34, %v656_v34  ;;  %v646_v34 = vld [vmem:[%s943_s4 + $0x30] sm:$0xff] }
  0xaf   :  { %180 = vst [vmem:[#allocation2 + $0x10] sm:$0x3] %v651_v33  ;;  %455 = vmatpush.bf16.msra.mxu0 %v646_v34 }
  0xb0   :  { %274 = vmatmul.bf16.vlgmr.msra.gmra.mxu1 %v265_v35  ;;  %v645_v35 = vld [vmem:[%s943_s4 + $0x28] sm:$0xff] }
  0xb3   :  { %456 = vmatpush.bf16.msra.mxu0 %v645_v35 }
 0x12d   :  { %v275_v43 = vpop.f32.mrf.mxu1 }
 0x12e   :  { %v276_v44 = vadd.f32 %v275_v43, %v264_v42  ;;  %v644_v42 = vld [vmem:[%s943_s4 + $0x20] sm:$0xff]  ;;  %v643_v43 = vld [vmem:[%s943_s4 + $0x18] sm:$0xff] }
 0x12f   :  { %457 = vmatpush.bf16.msra.mxu0 %v644_v42 }
 0x130   :  { %657 = vtanh.f32 %v276_v44  ;;  %v642_v44 = vld [vmem:[%s943_s4 + $0x10] sm:$0xff] }
 0x133   :  { %458 = vmatpush.bf16.msra.mxu0 %v643_v43 }
 0x135   :  { %v277_v45 = vpop.f32.mrf.mxu1 }
 0x136   :  { %v658_v46 = vpop.eup %657  ;;  %v641_v45 = vld [vmem:[%s943_s4 + $0x8] sm:$0xff] }
 0x137   :  { %280 = vst [vmem:[#allocation3 + $0x2] sm:$0x3] %v658_v46  ;;  %v282_v47 = vpack.c.bf16 %v658_v46, %v658_v46  ;;  %459 = vmatpush.bf16.msra.mxu0 %v642_v44  ;;  %v640_v46 = vld [vmem:[%s943_s4] sm:$0xff] }
 0x139   :  { %291 = vmatmul.bf16.vlgmr.msra.gmra.mxu2 %v282_v47  ;;  %v366_v47 = vld [vmem:[#allocation2 + $0x10] sm:$0x3] }
 0x13b   :  { %460 = vmatpush.bf16.msra.mxu0 %v641_v45 }
 0x13f   :  { %461 = vmatpush.bf16.msra.mxu0 %v640_v46 }
 0x1bc   :  { %v292_v55 = vpop.f32.mrf.mxu2 }
 0x1bd   :  { %v293_v56 = vadd.f32 %v292_v55, %v281_v54  ;;  %v652_v55 = vld [vmem:[%s944_s5] ss:$0 sm:$0xff] }
 0x1bf   :  { %659 = vtanh.f32 %v293_v56 }
 0x1c4   :  { %v294_v57 = vpop.f32.mrf.mxu2 }
 0x1c5   :  { %v660_v58 = vpop.eup %659 }
 0x1c6   :  { %297 = vst [vmem:[#allocation3 + $0x4] sm:$0x3] %v660_v58  ;;  %v299_v59 = vpack.c.bf16 %v660_v58, %v660_v58 }
 0x1c8   :  { %308 = vmatmul.bf16.vlgmr.msra.gmra.mxu3 %v299_v59 }
 0x24b   :  { %v309_v3 = vpop.f32.mrf.mxu3 }
 0x24c   :  { %v310_v4 = vadd.f32 %v309_v3, %v298_v2 }
 0x24e   :  { %661 = vtanh.f32 %v310_v4 }
 0x253   :  { %v311_v5 = vpop.f32.mrf.mxu3 }
 0x254   :  { %v662_v6 = vpop.eup %661 }
 0x255   :  { %314 = vst [vmem:[#allocation3 + $0x6] sm:$0x3] %v662_v6  ;;  %v316_v7 = vpack.c.bf16 %v662_v6, %v662_v6 }
 0x257   :  { %325 = vmatmul.bf16.vlgmr.msrb.gmra.mxu0 %v316_v7 }
 0x25c   :  { %v383_v52 = vld [vmem:[#allocation3] sm:$0xff] }
 0x2d4   :  { %v326_v15 = vpop.f32.mrf.mxu0 }
 0x2d5   :  { %v327_v16 = vadd.f32 %v326_v15, %v315_v14 }
 0x2d7   :  { %663 = vtanh.f32 %v327_v16 }
 0x2dc   :  { %v328_v17 = vpop.f32.mrf.mxu0 }
 0x2dd   :  { %v664_v18 = vpop.eup %663 }
 0x2de   :  { %331 = vst [vmem:[#allocation3 + $0x8] sm:$0x3] %v664_v18  ;;  %v333_v19 = vpack.c.bf16 %v664_v18, %v664_v18 }
 0x2e0   :  { %342 = vmatmul.bf16.vlgmr.msrb.gmra.mxu1 %v333_v19 }
 0x35d   :  { %v343_v27 = vpop.f32.mrf.mxu1 }
 0x35e   :  { %v344_v28 = vadd.f32 %v343_v27, %v332_v26 }
 0x360   :  { %665 = vtanh.f32 %v344_v28 }
 0x365   :  { %v345_v29 = vpop.f32.mrf.mxu1 }
 0x366   :  { %v666_v30 = vpop.eup %665 }
 0x367   :  { %348 = vst [vmem:[#allocation3 + $0xa] sm:$0x3] %v666_v30  ;;  %v350_v31 = vpack.c.bf16 %v666_v30, %v666_v30 }
 0x369   :  { %359 = vmatmul.bf16.vlgmr.msrb.gmra.mxu2 %v350_v31 }
 0x3ec   :  { %v360_v37 = vpop.f32.mrf.mxu2 }
 0x3ed   :  { %v361_v38 = vadd.f32 %v360_v37, %v349_v36 }
 0x3ef   :  { %667 = vtanh.f32 %v361_v38 }
 0x3f4   :  { %v362_v39 = vpop.f32.mrf.mxu2 }
 0x3f5   :  { %v668_v40 = vpop.eup %667 }
 0x3f6   :  { %365 = vst [vmem:[#allocation3 + $0xc] sm:$0x3] %v668_v40  ;;  %v367_v41 = vpack.c.bf16 %v668_v40, %v668_v40 }
 0x3f8   :  { %376 = vmatmul.bf16.vlgmr.msrb.gmra.mxu3 %v367_v41 }
 0x47b   :  { %v377_v48 = vpop.f32.mrf.mxu3 }
 0x47c   :  { %v378_v49 = vadd.f32 %v377_v48, %v366_v47 }
 0x47e   :  { %669 = vtanh.f32 %v378_v49 }
 0x483   :  { %v379_v50 = vpop.f32.mrf.mxu3 }
 0x484   :  { %v670_v51 = vpop.eup %669 }
 0x485   :  { %382 = vst [vmem:[#allocation3 + $0xe] sm:$0x3] %v670_v51 }
 0x48c   :  { %v384_v53 = vld [vmem:[#allocation3 + $0x8] sm:$0xff] }
 0x48d   :  { %v385_v54 = vpack.c.bf16 %v384_v53, %v383_v52 }
 0x48f   :  { %462 = vmatmul.bf16.vlgmr.msra.gmra.mxu0 %v385_v54 }
 0x50c   :  { %v463_v56 = vpop.f32.mrf.mxu0 }
 0x50d   :  { %v464_v57 = vadd.f32 %v652_v55, %v463_v56 }
 0x50f   :  { %468 = vst [vmem:[%s945_s6] sm:$0xff] %v464_v57 }
 0x514   :  { %v465_v58 = vpop.f32.mrf.mxu0 }
 0x515   :  { %v466_v59 = vadd.f32 %v652_v55, %v465_v58 }
 0x517   :  { %469 = vst [vmem:[%s945_s6 + $0x8] sm:$0xff] %v466_v59 }

</bundles_post_ra>
